<compile_context>
chip_gen: v6e
topology: v6e:2x2x1
jax: 0.10.0
libtpu: 0.0.40
codegen_flags: <defaults>
</compile_context>

<pallas_src>
import math
from functools import partial

import numpy as np
import jax
import jax.numpy as jnp
from jax import lax
from jax.experimental import pallas as pl
from jax.experimental.pallas import tpu as pltpu


_OUT_W = 128            # lane-dense output slab width (>= n_cvs + 1)
_HALF_PI = 0.5 * math.pi


# --------------------- one-time parameter preparation -----------------------

def prepare_params(params, n_models, n_cvs, features):
    """Packs MultiLinearLayer params into 3 arrays (done ONCE, off the hot path).

    Returns
      w_stack : (2*L, D, D)   [0..L-1]  block-diagonal forward weights
                              [L..2L-1] their transposes (backward path)
      bvec    : (L+1, 1, D)   rows 0..L-1 packed layer biases, row L packed wf
      bcol    : (M, 1, OUT_W) per-model output-slab bias (bf at lane n_cvs)

    with D = max(M*max(features), 2*M*n_cvs).  Model m occupies lanes
    [m*f_l, (m+1)*f_l) of layer-l activations; everything above is zero-padded.
    """
    f = list(features)
    L = len(f)
    M = n_models
    D = max(M * max(f), 2 * M * n_cvs)

    def to_np(x):
        return np.asarray(jax.device_get(x), dtype=np.float32)

    # layer 0: embedded input layout is [cos_0 .. cos_{M-1} | sin_0 .. sin_{M-1} | pad]
    w0 = to_np(params["w0"])                                  # (M, 2*n_cvs, f0)
    W0 = np.zeros((D, D), np.float32)
    for m in range(M):
        W0[m*n_cvs:(m+1)*n_cvs, m*f[0]:(m+1)*f[0]] = w0[m, :n_cvs, :]
        W0[M*n_cvs + m*n_cvs:M*n_cvs + (m+1)*n_cvs,
           m*f[0]:(m+1)*f[0]] = w0[m, n_cvs:, :]
    w_fwd = [W0]
    for l in range(1, L):
        wl = to_np(params[f"w{l}"])                           # (M, f[l-1], f[l])
        Wl = np.zeros((D, D), np.float32)
        for m in range(M):
            Wl[m*f[l-1]:(m+1)*f[l-1], m*f[l]:(m+1)*f[l]] = wl[m]
        w_fwd.append(Wl)
    w_stack = np.stack(w_fwd + [W.T for W in w_fwd], axis=0)  # (2L, D, D)

    bvec = np.zeros((L + 1, 1, D), np.float32)
    for l in range(L):
        bl = to_np(params[f"b{l}"])                           # (M, 1, f[l])
        for m in range(M):
            bvec[l, 0, m*f[l]:(m+1)*f[l]] = bl[m, 0]
    wf = to_np(params["wf"])                                  # (M, f[-1], 1)
    for m in range(M):
        bvec[L, 0, m*f[-1]:(m+1)*f[-1]] = wf[m, :, 0]

    bf = to_np(params["bf"])                                  # (M, 1, 1)
    bcol = np.zeros((M, 1, _OUT_W), np.float32)
    for m in range(M):
        bcol[m, 0, n_cvs] = bf[m, 0, 0]

    return jnp.asarray(w_stack), jnp.asarray(bvec), jnp.asarray(bcol)


# ----------------------------- Pallas kernel --------------------------------

def _make_kernel(features):
    f_last = features[-1]

    def kernel(cvs_ref, w_ref, bvec_ref, bcol_ref, out_ref):
        M, B, n = cvs_ref.shape
        two_l, D, _ = w_ref.shape
        L = two_l // 2
        out_w = out_ref.shape[-1]
        Mn = M * n
        f32 = jnp.float32

        # ---- lane-pack the embedding angles with a constant scatter matmul ----
        # theta[:, m*n + j]      = cvs[m, :, j]
        # theta[:, Mn + m*n + j] = cvs[m, :, j] - pi/2     (cos(x - pi/2) = sin(x))
        col = lax.broadcasted_iota(jnp.int32, (n, D), 1)
        row = lax.broadcasted_iota(jnp.int32, (n, D), 0)
        lane = lax.broadcasted_iota(jnp.int32, (1, D), 1)
        sin_sel = ((lane >= Mn) & (lane < 2 * Mn)).astype(f32)
        theta = (-_HALF_PI) * sin_sel                          # (1, D)
        for m in range(M):
            e_m = ((col == row + m * n)
                   | (col == row + Mn + m * n)).astype(f32)    # (n, D) const scatter
            theta = theta + jnp.dot(cvs_ref[m], e_m, preferred_element_type=f32)

        embed = jnp.cos(theta)     # (B, D): [cos cvs | sin cvs | pad]
        sin_t = jnp.sin(theta)     # d cos(theta)/d theta = -sin(theta)

        # ---- fused forward MLP (models block-diagonal along the lane axis) ----
        h = embed
        hs = []
        for l in range(L):
            h = jnp.tanh(jnp.dot(h, w_ref[l], preferred_element_type=f32)
                         + bvec_ref[l])
            hs.append(h)
        wf_row = bvec_ref[L]                                   # (1, D) packed wf
        prod = h * wf_row                                      # per-lane energy terms

        # ---- analytic backward (pre-transposed block-diagonal weights) ----
        g = wf_row * (1.0 - h * h)                             # dE/dz_{L-1}
        for l in range(L - 1, 0, -1):
            g = jnp.dot(g, w_ref[L + l], preferred_element_type=f32)
            hp = hs[l - 1]
            g = g * (1.0 - hp * hp)
        d_embed = jnp.dot(g, w_ref[L], preferred_element_type=f32)
        d_theta = -(d_embed * sin_t)                           # dE/d theta, (B, D)

        # ---- lane-dense output slab: [force | energy | zero-pad] per model ----
        colD = lax.broadcasted_iota(jnp.int32, (D, out_w), 1)
        rowD = lax.broadcasted_iota(jnp.int32, (D, out_w), 0)
        for m in range(M):
            # sums model m's cos-lane + sin-lane theta gradients into cols [0, n)
            p_force = (((rowD == colD + m * n)
                        | (rowD == colD + Mn + m * n))
                       & (colD < n)).astype(f32)               # (D, out_w)
            # sums model m's final-hidden energy contributions into column n
            q_energy = ((colD == n)
                        & (rowD >= m * f_last)
                        & (rowD < (m + 1) * f_last)).astype(f32)
            out_ref[m] = (jnp.dot(d_theta, p_force, preferred_element_type=f32)
                          + jnp.dot(prod, q_energy, preferred_element_type=f32)
                          + bcol_ref[m])

    return kernel


# ------------------------------- wrapper ------------------------------------

@partial(jax.jit, static_argnames=("features",))
def abstract_cvnet_forward(cvs, w_stack, bvec, bcol, features):
    """Pallas implementation of AbstractCVNet.forward (eval mode).

    Args:
      cvs:      (n_models, batch, n_cvs) float32
      w_stack, bvec, bcol: packed parameters from prepare_params()
      features: hidden feature sizes, e.g. (32, 32, 32, 32) (static)
    Returns:
      energy      : (n_models, batch, 1)
      mean_forces : (n_models, n_models, batch, n_cvs)
    """
    n_models, batch, n_cvs = cvs.shape
    assert n_cvs + 1 <= _OUT_W
    L = len(features)
    D = w_stack.shape[-1]

    # advisory cost estimate: fwd + bwd matmuls, theta/output scatters, transcend.
    flops = (2 * batch * D * D * 2 * L
             + 2 * batch * n_cvs * D * n_models
             + 2 * 2 * batch * D * _OUT_W * n_models
             + 12 * batch * D)
    transcendentals = batch * D * (L + 2)
    bytes_accessed = (sum(int(a.size) * a.dtype.itemsize
                          for a in (cvs, w_stack, bvec, bcol))
                      + n_models * batch * _OUT_W * 4)

    vmem = pl.BlockSpec(memory_space=pltpu.MemorySpace.VMEM)
    slab = pl.pallas_call(
        _make_kernel(tuple(features)),
        out_shape=jax.ShapeDtypeStruct((n_models, batch, _OUT_W), jnp.float32),
        in_specs=[vmem] * 4,
        out_specs=vmem,
        cost_estimate=pl.CostEstimate(flops=int(flops),
                                      transcendentals=int(transcendentals),
                                      bytes_accessed=int(bytes_accessed)),
    )(cvs, w_stack, bvec, bcol)

    forces = slab[:, :, :n_cvs]                                # (M, B, n_cvs)
    energy = slab[:, :, n_cvs:n_cvs + 1]                       # (M, B, 1)

    # torch semantics: mean_forces[i] = grad(energy[i], cvs) over the FULL cvs
    # tensor -> nonzero only on the [i, i] model slice (diagonal scatter).
    idx = jnp.arange(n_models)
    mean_forces = jnp.zeros((n_models, n_models, batch, n_cvs),
                            cvs.dtype).at[idx, idx].set(forces)
    return energy, mean_forces


# --------------------------- parameter init ---------------------------------

def init_params(key, n_models, n_cvs, features):
    """Deterministic init mimicking MultiLinearLayer (kaiming_uniform, a=sqrt(5))."""
    sizes = [2 * n_cvs] + list(features) + [1]
    names = [str(i) for i in range(len(features))] + ["f"]
    params = {}
    for idx, name in enumerate(names):
        size_in, size_out = sizes[idx], sizes[idx + 1]
        key, sub = jax.random.split(key)
        # torch fan_in on (n_models, size_in, size_out) = size_in * size_out.
        bound = 1.0 / math.sqrt(size_in * size_out)
        params[f"w{name}"] = jax.random.uniform(
            sub, (n_models, size_in, size_out), jnp.float32, -bound, bound)
        params[f"b{name}"] = jnp.zeros((n_models, 1, size_out), jnp.float32)
    return params


# ------------------------------ reference -----------------------------------

def energy_ref_fn(cvs, params, features):
    x = jnp.concatenate([jnp.cos(cvs), jnp.sin(cvs)], axis=-1)
    h = x
    for i in range(len(features)):
        h = jnp.tanh(jnp.matmul(h, params[f"w{i}"]) + params[f"b{i}"])
    return jnp.matmul(h, params["wf"]) + params["bf"]


def forward_ref(cvs, params, features):
    energy = energy_ref_fn(cvs, params, features)
    n_models = cvs.shape[0]
    force_list = []
    for i in range(n_models):
        g = jax.grad(lambda c: energy_ref_fn(c, params, features)[i].sum())(cvs)
        force_list.append(g)
    return energy, jnp.stack(force_list, axis=0)


# --------------------------------- main --------------------------------------

if __name__ == "__main__":
    n_models = 2
    n_cvs = 4
    batch = 8
    features = (32, 32, 32, 32)

    key = jax.random.PRNGKey(0)
    key, pkey, ckey = jax.random.split(key, 3)
    params = init_params(pkey, n_models, n_cvs, features)
    cvs = jax.random.uniform(ckey, (n_models, batch, n_cvs), jnp.float32,
                             -math.pi, math.pi)

    # One-time packing (hoisted out of the hot path).
    w_stack, bvec, bcol = prepare_params(params, n_models, n_cvs, features)

    energy, mean_forces = abstract_cvnet_forward(cvs, w_stack, bvec, bcol,
                                                 features=features)
    energy = jax.block_until_ready(energy)
    mean_forces = jax.block_until_ready(mean_forces)

    # Validate against a pure-JAX reference (autograd-based forces).
    e_ref, f_ref = forward_ref(cvs, params, features)
    assert energy.shape == (n_models, batch, 1)
    assert mean_forces.shape == (n_models, n_models, batch, n_cvs)
    assert jnp.allclose(energy, e_ref, atol=1e-5, rtol=1e-4)
    assert jnp.allclose(mean_forces, f_ref, atol=1e-5, rtol=1e-4)

    print("KERNEL_OK")
</pallas_src>

<mosaic_0001>
module attributes {stable_mosaic.version = 11 : i64} {
  func.func @kernel(%arg0: memref<2x8x4xf32, #tpu.memory_space<vmem>>, %arg1: memref<8x64x64xf32, #tpu.memory_space<vmem>>, %arg2: memref<5x1x64xf32, #tpu.memory_space<vmem>>, %arg3: memref<2x1x128xf32, #tpu.memory_space<vmem>>, %arg4: memref<2x8x128xf32, #tpu.memory_space<vmem>>) attributes {dimension_semantics = [], scalar_prefetch = 0 : i64, scratch_operands = 0 : i64, tpu.core_type = #tpu.core_type<tc>} {
    %0 = tpu.iota {dimensions = array<i32: 1>} : vector<4x64xi32>
    %1 = tpu.iota {dimensions = array<i32: 0>} : vector<4x64xi32>
    %2 = tpu.iota {dimensions = array<i32: 1>} : vector<1x64xi32>
    %c8_i32 = arith.constant 8 : i32
    %3 = vector.broadcast %c8_i32 : i32 to vector<1x64xi32>
    %4 = arith.cmpi sge, %2, %3 : vector<1x64xi32>
    %c16_i32 = arith.constant 16 : i32
    %5 = vector.broadcast %c16_i32 : i32 to vector<1x64xi32>
    %6 = arith.cmpi slt, %2, %5 : vector<1x64xi32>
    %7 = arith.andi %4, %6 : vector<1x64xi1>
    %8 = arith.extui %7 : vector<1x64xi1> to vector<1x64xi32>
    %9 = arith.sitofp %8 : vector<1x64xi32> to vector<1x64xf32>
    %cst = arith.constant -1.57079637 : f32
    %10 = vector.broadcast %cst : f32 to vector<1x64xf32>
    %11 = arith.mulf %10, %9 : vector<1x64xf32>
    %c0_i32 = arith.constant 0 : i32
    %12 = vector.broadcast %c0_i32 : i32 to vector<4x64xi32>
    %13 = arith.addi %1, %12 : vector<4x64xi32>
    %14 = arith.cmpi eq, %0, %13 : vector<4x64xi32>
    %c8_i32_0 = arith.constant 8 : i32
    %15 = vector.broadcast %c8_i32_0 : i32 to vector<4x64xi32>
    %16 = arith.addi %1, %15 : vector<4x64xi32>
    %c0_i32_1 = arith.constant 0 : i32
    %17 = vector.broadcast %c0_i32_1 : i32 to vector<4x64xi32>
    %18 = arith.addi %16, %17 : vector<4x64xi32>
    %19 = arith.cmpi eq, %0, %18 : vector<4x64xi32>
    %20 = arith.ori %14, %19 : vector<4x64xi1>
    %21 = arith.extui %20 : vector<4x64xi1> to vector<4x64xi32>
    %22 = arith.sitofp %21 : vector<4x64xi32> to vector<4x64xf32>
    %c0 = arith.constant 0 : index
    %c0_2 = arith.constant 0 : index
    %c0_3 = arith.constant 0 : index
    %23 = vector.load %arg0[%c0, %c0_2, %c0_3] : memref<2x8x4xf32, #tpu.memory_space<vmem>>, vector<1x8x4xf32>
    %24 = vector.shape_cast %23 : vector<1x8x4xf32> to vector<8x4xf32>
    %cst_4 = arith.constant dense<0.000000e+00> : vector<8x64xf32>
    %25 = tpu.matmul %24, %22, %cst_4 {dimension_numbers = #tpu.dot_dimension_numbers<[1], [0], [0], [1], [0, 0, 1, 1], [], []>} : vector<8x4xf32>, vector<4x64xf32>, vector<8x64xf32> -> vector<8x64xf32>
    %26 = vector.broadcast %11 : vector<1x64xf32> to vector<8x64xf32>
    %27 = arith.addf %26, %25 : vector<8x64xf32>
    %c4_i32 = arith.constant 4 : i32
    %28 = vector.broadcast %c4_i32 : i32 to vector<4x64xi32>
    %29 = arith.addi %1, %28 : vector<4x64xi32>
    %30 = arith.cmpi eq, %0, %29 : vector<4x64xi32>
    %c8_i32_5 = arith.constant 8 : i32
    %31 = vector.broadcast %c8_i32_5 : i32 to vector<4x64xi32>
    %32 = arith.addi %1, %31 : vector<4x64xi32>
    %c4_i32_6 = arith.constant 4 : i32
    %33 = vector.broadcast %c4_i32_6 : i32 to vector<4x64xi32>
    %34 = arith.addi %32, %33 : vector<4x64xi32>
    %35 = arith.cmpi eq, %0, %34 : vector<4x64xi32>
    %36 = arith.ori %30, %35 : vector<4x64xi1>
    %37 = arith.extui %36 : vector<4x64xi1> to vector<4x64xi32>
    %38 = arith.sitofp %37 : vector<4x64xi32> to vector<4x64xf32>
    %c1 = arith.constant 1 : index
    %c0_7 = arith.constant 0 : index
    %c0_8 = arith.constant 0 : index
    %39 = vector.load %arg0[%c1, %c0_7, %c0_8] : memref<2x8x4xf32, #tpu.memory_space<vmem>>, vector<1x8x4xf32>
    %40 = vector.shape_cast %39 : vector<1x8x4xf32> to vector<8x4xf32>
    %cst_9 = arith.constant dense<0.000000e+00> : vector<8x64xf32>
    %41 = tpu.matmul %40, %38, %cst_9 {dimension_numbers = #tpu.dot_dimension_numbers<[1], [0], [0], [1], [0, 0, 1, 1], [], []>} : vector<8x4xf32>, vector<4x64xf32>, vector<8x64xf32> -> vector<8x64xf32>
    %42 = arith.addf %27, %41 : vector<8x64xf32>
    %43 = math.cos %42 : vector<8x64xf32>
    %44 = math.sin %42 : vector<8x64xf32>
    %c0_10 = arith.constant 0 : index
    %c0_11 = arith.constant 0 : index
    %c0_12 = arith.constant 0 : index
    %45 = vector.load %arg1[%c0_10, %c0_11, %c0_12] : memref<8x64x64xf32, #tpu.memory_space<vmem>>, vector<1x64x64xf32>
    %46 = vector.shape_cast %45 : vector<1x64x64xf32> to vector<64x64xf32>
    %cst_13 = arith.constant dense<0.000000e+00> : vector<8x64xf32>
    %47 = tpu.matmul %43, %46, %cst_13 {dimension_numbers = #tpu.dot_dimension_numbers<[1], [0], [0], [1], [0, 0, 1, 1], [], []>} : vector<8x64xf32>, vector<64x64xf32>, vector<8x64xf32> -> vector<8x64xf32>
    %c0_14 = arith.constant 0 : index
    %c0_15 = arith.constant 0 : index
    %c0_16 = arith.constant 0 : index
    %48 = vector.load %arg2[%c0_14, %c0_15, %c0_16] : memref<5x1x64xf32, #tpu.memory_space<vmem>>, vector<1x1x64xf32>
    %49 = vector.shape_cast %48 : vector<1x1x64xf32> to vector<1x64xf32>
    %50 = vector.broadcast %49 : vector<1x64xf32> to vector<8x64xf32>
    %51 = arith.addf %47, %50 : vector<8x64xf32>
    %52 = math.tanh %51 : vector<8x64xf32>
    %c1_17 = arith.constant 1 : index
    %c0_18 = arith.constant 0 : index
    %c0_19 = arith.constant 0 : index
    %53 = vector.load %arg1[%c1_17, %c0_18, %c0_19] : memref<8x64x64xf32, #tpu.memory_space<vmem>>, vector<1x64x64xf32>
    %54 = vector.shape_cast %53 : vector<1x64x64xf32> to vector<64x64xf32>
    %cst_20 = arith.constant dense<0.000000e+00> : vector<8x64xf32>
    %55 = tpu.matmul %52, %54, %cst_20 {dimension_numbers = #tpu.dot_dimension_numbers<[1], [0], [0], [1], [0, 0, 1, 1], [], []>} : vector<8x64xf32>, vector<64x64xf32>, vector<8x64xf32> -> vector<8x64xf32>
    %c1_21 = arith.constant 1 : index
    %c0_22 = arith.constant 0 : index
    %c0_23 = arith.constant 0 : index
    %56 = vector.load %arg2[%c1_21, %c0_22, %c0_23] : memref<5x1x64xf32, #tpu.memory_space<vmem>>, vector<1x1x64xf32>
    %57 = vector.shape_cast %56 : vector<1x1x64xf32> to vector<1x64xf32>
    %58 = vector.broadcast %57 : vector<1x64xf32> to vector<8x64xf32>
    %59 = arith.addf %55, %58 : vector<8x64xf32>
    %60 = math.tanh %59 : vector<8x64xf32>
    %c2 = arith.constant 2 : index
    %c0_24 = arith.constant 0 : index
    %c0_25 = arith.constant 0 : index
    %61 = vector.load %arg1[%c2, %c0_24, %c0_25] : memref<8x64x64xf32, #tpu.memory_space<vmem>>, vector<1x64x64xf32>
    %62 = vector.shape_cast %61 : vector<1x64x64xf32> to vector<64x64xf32>
    %cst_26 = arith.constant dense<0.000000e+00> : vector<8x64xf32>
    %63 = tpu.matmul %60, %62, %cst_26 {dimension_numbers = #tpu.dot_dimension_numbers<[1], [0], [0], [1], [0, 0, 1, 1], [], []>} : vector<8x64xf32>, vector<64x64xf32>, vector<8x64xf32> -> vector<8x64xf32>
    %c2_27 = arith.constant 2 : index
    %c0_28 = arith.constant 0 : index
    %c0_29 = arith.constant 0 : index
    %64 = vector.load %arg2[%c2_27, %c0_28, %c0_29] : memref<5x1x64xf32, #tpu.memory_space<vmem>>, vector<1x1x64xf32>
    %65 = vector.shape_cast %64 : vector<1x1x64xf32> to vector<1x64xf32>
    %66 = vector.broadcast %65 : vector<1x64xf32> to vector<8x64xf32>
    %67 = arith.addf %63, %66 : vector<8x64xf32>
    %68 = math.tanh %67 : vector<8x64xf32>
    %c3 = arith.constant 3 : index
    %c0_30 = arith.constant 0 : index
    %c0_31 = arith.constant 0 : index
    %69 = vector.load %arg1[%c3, %c0_30, %c0_31] : memref<8x64x64xf32, #tpu.memory_space<vmem>>, vector<1x64x64xf32>
    %70 = vector.shape_cast %69 : vector<1x64x64xf32> to vector<64x64xf32>
    %cst_32 = arith.constant dense<0.000000e+00> : vector<8x64xf32>
    %71 = tpu.matmul %68, %70, %cst_32 {dimension_numbers = #tpu.dot_dimension_numbers<[1], [0], [0], [1], [0, 0, 1, 1], [], []>} : vector<8x64xf32>, vector<64x64xf32>, vector<8x64xf32> -> vector<8x64xf32>
    %c3_33 = arith.constant 3 : index
    %c0_34 = arith.constant 0 : index
    %c0_35 = arith.constant 0 : index
    %72 = vector.load %arg2[%c3_33, %c0_34, %c0_35] : memref<5x1x64xf32, #tpu.memory_space<vmem>>, vector<1x1x64xf32>
    %73 = vector.shape_cast %72 : vector<1x1x64xf32> to vector<1x64xf32>
    %74 = vector.broadcast %73 : vector<1x64xf32> to vector<8x64xf32>
    %75 = arith.addf %71, %74 : vector<8x64xf32>
    %76 = math.tanh %75 : vector<8x64xf32>
    %c4 = arith.constant 4 : index
    %c0_36 = arith.constant 0 : index
    %c0_37 = arith.constant 0 : index
    %77 = vector.load %arg2[%c4, %c0_36, %c0_37] : memref<5x1x64xf32, #tpu.memory_space<vmem>>, vector<1x1x64xf32>
    %78 = vector.shape_cast %77 : vector<1x1x64xf32> to vector<1x64xf32>
    %79 = vector.broadcast %78 : vector<1x64xf32> to vector<8x64xf32>
    %80 = arith.mulf %76, %79 : vector<8x64xf32>
    %81 = arith.mulf %76, %76 : vector<8x64xf32>
    %cst_38 = arith.constant 1.000000e+00 : f32
    %82 = vector.broadcast %cst_38 : f32 to vector<8x64xf32>
    %83 = arith.subf %82, %81 : vector<8x64xf32>
    %84 = vector.broadcast %78 : vector<1x64xf32> to vector<8x64xf32>
    %85 = arith.mulf %84, %83 : vector<8x64xf32>
    %c7 = arith.constant 7 : index
    %c0_39 = arith.constant 0 : index
    %c0_40 = arith.constant 0 : index
    %86 = vector.load %arg1[%c7, %c0_39, %c0_40] : memref<8x64x64xf32, #tpu.memory_space<vmem>>, vector<1x64x64xf32>
    %87 = vector.shape_cast %86 : vector<1x64x64xf32> to vector<64x64xf32>
    %cst_41 = arith.constant dense<0.000000e+00> : vector<8x64xf32>
    %88 = tpu.matmul %85, %87, %cst_41 {dimension_numbers = #tpu.dot_dimension_numbers<[1], [0], [0], [1], [0, 0, 1, 1], [], []>} : vector<8x64xf32>, vector<64x64xf32>, vector<8x64xf32> -> vector<8x64xf32>
    %89 = arith.mulf %68, %68 : vector<8x64xf32>
    %cst_42 = arith.constant 1.000000e+00 : f32
    %90 = vector.broadcast %cst_42 : f32 to vector<8x64xf32>
    %91 = arith.subf %90, %89 : vector<8x64xf32>
    %92 = arith.mulf %88, %91 : vector<8x64xf32>
    %c6 = arith.constant 6 : index
    %c0_43 = arith.constant 0 : index
    %c0_44 = arith.constant 0 : index
    %93 = vector.load %arg1[%c6, %c0_43, %c0_44] : memref<8x64x64xf32, #tpu.memory_space<vmem>>, vector<1x64x64xf32>
    %94 = vector.shape_cast %93 : vector<1x64x64xf32> to vector<64x64xf32>
    %cst_45 = arith.constant dense<0.000000e+00> : vector<8x64xf32>
    %95 = tpu.matmul %92, %94, %cst_45 {dimension_numbers = #tpu.dot_dimension_numbers<[1], [0], [0], [1], [0, 0, 1, 1], [], []>} : vector<8x64xf32>, vector<64x64xf32>, vector<8x64xf32> -> vector<8x64xf32>
    %96 = arith.mulf %60, %60 : vector<8x64xf32>
    %cst_46 = arith.constant 1.000000e+00 : f32
    %97 = vector.broadcast %cst_46 : f32 to vector<8x64xf32>
    %98 = arith.subf %97, %96 : vector<8x64xf32>
    %99 = arith.mulf %95, %98 : vector<8x64xf32>
    %c5 = arith.constant 5 : index
    %c0_47 = arith.constant 0 : index
    %c0_48 = arith.constant 0 : index
    %100 = vector.load %arg1[%c5, %c0_47, %c0_48] : memref<8x64x64xf32, #tpu.memory_space<vmem>>, vector<1x64x64xf32>
    %101 = vector.shape_cast %100 : vector<1x64x64xf32> to vector<64x64xf32>
    %cst_49 = arith.constant dense<0.000000e+00> : vector<8x64xf32>
    %102 = tpu.matmul %99, %101, %cst_49 {dimension_numbers = #tpu.dot_dimension_numbers<[1], [0], [0], [1], [0, 0, 1, 1], [], []>} : vector<8x64xf32>, vector<64x64xf32>, vector<8x64xf32> -> vector<8x64xf32>
    %103 = arith.mulf %52, %52 : vector<8x64xf32>
    %cst_50 = arith.constant 1.000000e+00 : f32
    %104 = vector.broadcast %cst_50 : f32 to vector<8x64xf32>
    %105 = arith.subf %104, %103 : vector<8x64xf32>
    %106 = arith.mulf %102, %105 : vector<8x64xf32>
    %c4_51 = arith.constant 4 : index
    %c0_52 = arith.constant 0 : index
    %c0_53 = arith.constant 0 : index
    %107 = vector.load %arg1[%c4_51, %c0_52, %c0_53] : memref<8x64x64xf32, #tpu.memory_space<vmem>>, vector<1x64x64xf32>
    %108 = vector.shape_cast %107 : vector<1x64x64xf32> to vector<64x64xf32>
    %cst_54 = arith.constant dense<0.000000e+00> : vector<8x64xf32>
    %109 = tpu.matmul %106, %108, %cst_54 {dimension_numbers = #tpu.dot_dimension_numbers<[1], [0], [0], [1], [0, 0, 1, 1], [], []>} : vector<8x64xf32>, vector<64x64xf32>, vector<8x64xf32> -> vector<8x64xf32>
    %110 = arith.mulf %109, %44 : vector<8x64xf32>
    %cst_55 = arith.constant 0.000000e+00 : f32
    %111 = vector.broadcast %cst_55 : f32 to vector<8x64xf32>
    %112 = arith.subf %111, %110 : vector<8x64xf32>
    %113 = tpu.iota {dimensions = array<i32: 1>} : vector<64x128xi32>
    %114 = tpu.iota {dimensions = array<i32: 0>} : vector<64x128xi32>
    %c0_i32_56 = arith.constant 0 : i32
    %115 = vector.broadcast %c0_i32_56 : i32 to vector<64x128xi32>
    %116 = arith.addi %113, %115 : vector<64x128xi32>
    %117 = arith.cmpi eq, %114, %116 : vector<64x128xi32>
    %c8_i32_57 = arith.constant 8 : i32
    %118 = vector.broadcast %c8_i32_57 : i32 to vector<64x128xi32>
    %119 = arith.addi %113, %118 : vector<64x128xi32>
    %c0_i32_58 = arith.constant 0 : i32
    %120 = vector.broadcast %c0_i32_58 : i32 to vector<64x128xi32>
    %121 = arith.addi %119, %120 : vector<64x128xi32>
    %122 = arith.cmpi eq, %114, %121 : vector<64x128xi32>
    %123 = arith.ori %117, %122 : vector<64x128xi1>
    %c4_i32_59 = arith.constant 4 : i32
    %124 = vector.broadcast %c4_i32_59 : i32 to vector<64x128xi32>
    %125 = arith.cmpi slt, %113, %124 : vector<64x128xi32>
    %126 = arith.andi %123, %125 : vector<64x128xi1>
    %127 = arith.extui %126 : vector<64x128xi1> to vector<64x128xi32>
    %128 = arith.sitofp %127 : vector<64x128xi32> to vector<64x128xf32>
    %c4_i32_60 = arith.constant 4 : i32
    %129 = vector.broadcast %c4_i32_60 : i32 to vector<64x128xi32>
    %130 = arith.cmpi eq, %113, %129 : vector<64x128xi32>
    %c0_i32_61 = arith.constant 0 : i32
    %131 = vector.broadcast %c0_i32_61 : i32 to vector<64x128xi32>
    %132 = arith.cmpi sge, %114, %131 : vector<64x128xi32>
    %133 = arith.andi %130, %132 : vector<64x128xi1>
    %c32_i32 = arith.constant 32 : i32
    %134 = vector.broadcast %c32_i32 : i32 to vector<64x128xi32>
    %135 = arith.cmpi slt, %114, %134 : vector<64x128xi32>
    %136 = arith.andi %133, %135 : vector<64x128xi1>
    %137 = arith.extui %136 : vector<64x128xi1> to vector<64x128xi32>
    %138 = arith.sitofp %137 : vector<64x128xi32> to vector<64x128xf32>
    %cst_62 = arith.constant dense<0.000000e+00> : vector<8x128xf32>
    %139 = tpu.matmul %112, %128, %cst_62 {dimension_numbers = #tpu.dot_dimension_numbers<[1], [0], [0], [1], [0, 0, 1, 1], [], []>} : vector<8x64xf32>, vector<64x128xf32>, vector<8x128xf32> -> vector<8x128xf32>
    %cst_63 = arith.constant dense<0.000000e+00> : vector<8x128xf32>
    %140 = tpu.matmul %80, %138, %cst_63 {dimension_numbers = #tpu.dot_dimension_numbers<[1], [0], [0], [1], [0, 0, 1, 1], [], []>} : vector<8x64xf32>, vector<64x128xf32>, vector<8x128xf32> -> vector<8x128xf32>
    %141 = arith.addf %139, %140 : vector<8x128xf32>
    %c0_64 = arith.constant 0 : index
    %c0_65 = arith.constant 0 : index
    %c0_66 = arith.constant 0 : index
    %142 = vector.load %arg3[%c0_64, %c0_65, %c0_66] : memref<2x1x128xf32, #tpu.memory_space<vmem>>, vector<1x1x128xf32>
    %143 = vector.shape_cast %142 : vector<1x1x128xf32> to vector<1x128xf32>
    %144 = vector.broadcast %143 : vector<1x128xf32> to vector<8x128xf32>
    %145 = arith.addf %141, %144 : vector<8x128xf32>
    %c0_67 = arith.constant 0 : index
    %c0_68 = arith.constant 0 : index
    %c0_69 = arith.constant 0 : index
    %146 = vector.load %arg4[%c0_67, %c0_68, %c0_69] : memref<2x8x128xf32, #tpu.memory_space<vmem>>, vector<1x8x128xf32>
    %147 = vector.shape_cast %146 : vector<1x8x128xf32> to vector<8x128xf32>
    %148 = vector.shape_cast %145 : vector<8x128xf32> to vector<1x8x128xf32>
    tpu.vector_store %arg4[%c0_67, %c0_68, %c0_69], %148 {strides = array<i32>} : memref<2x8x128xf32, #tpu.memory_space<vmem>>, vector<1x8x128xf32>,
    %c4_i32_70 = arith.constant 4 : i32
    %149 = vector.broadcast %c4_i32_70 : i32 to vector<64x128xi32>
    %150 = arith.addi %113, %149 : vector<64x128xi32>
    %151 = arith.cmpi eq, %114, %150 : vector<64x128xi32>
    %c8_i32_71 = arith.constant 8 : i32
    %152 = vector.broadcast %c8_i32_71 : i32 to vector<64x128xi32>
    %153 = arith.addi %113, %152 : vector<64x128xi32>
    %c4_i32_72 = arith.constant 4 : i32
    %154 = vector.broadcast %c4_i32_72 : i32 to vector<64x128xi32>
    %155 = arith.addi %153, %154 : vector<64x128xi32>
    %156 = arith.cmpi eq, %114, %155 : vector<64x128xi32>
    %157 = arith.ori %151, %156 : vector<64x128xi1>
    %c4_i32_73 = arith.constant 4 : i32
    %158 = vector.broadcast %c4_i32_73 : i32 to vector<64x128xi32>
    %159 = arith.cmpi slt, %113, %158 : vector<64x128xi32>
    %160 = arith.andi %157, %159 : vector<64x128xi1>
    %161 = arith.extui %160 : vector<64x128xi1> to vector<64x128xi32>
    %162 = arith.sitofp %161 : vector<64x128xi32> to vector<64x128xf32>
    %c4_i32_74 = arith.constant 4 : i32
    %163 = vector.broadcast %c4_i32_74 : i32 to vector<64x128xi32>
    %164 = arith.cmpi eq, %113, %163 : vector<64x128xi32>
    %c32_i32_75 = arith.constant 32 : i32
    %165 = vector.broadcast %c32_i32_75 : i32 to vector<64x128xi32>
    %166 = arith.cmpi sge, %114, %165 : vector<64x128xi32>
    %167 = arith.andi %164, %166 : vector<64x128xi1>
    %c64_i32 = arith.constant 64 : i32
    %168 = vector.broadcast %c64_i32 : i32 to vector<64x128xi32>
    %169 = arith.cmpi slt, %114, %168 : vector<64x128xi32>
    %170 = arith.andi %167, %169 : vector<64x128xi1>
    %171 = arith.extui %170 : vector<64x128xi1> to vector<64x128xi32>
    %172 = arith.sitofp %171 : vector<64x128xi32> to vector<64x128xf32>
    %cst_76 = arith.constant dense<0.000000e+00> : vector<8x128xf32>
    %173 = tpu.matmul %112, %162, %cst_76 {dimension_numbers = #tpu.dot_dimension_numbers<[1], [0], [0], [1], [0, 0, 1, 1], [], []>} : vector<8x64xf32>, vector<64x128xf32>, vector<8x128xf32> -> vector<8x128xf32>
    %cst_77 = arith.constant dense<0.000000e+00> : vector<8x128xf32>
    %174 = tpu.matmul %80, %172, %cst_77 {dimension_numbers = #tpu.dot_dimension_numbers<[1], [0], [0], [1], [0, 0, 1, 1], [], []>} : vector<8x64xf32>, vector<64x128xf32>, vector<8x128xf32> -> vector<8x128xf32>
    %175 = arith.addf %173, %174 : vector<8x128xf32>
    %c1_78 = arith.constant 1 : index
    %c0_79 = arith.constant 0 : index
    %c0_80 = arith.constant 0 : index
    %176 = vector.load %arg3[%c1_78, %c0_79, %c0_80] : memref<2x1x128xf32, #tpu.memory_space<vmem>>, vector<1x1x128xf32>
    %177 = vector.shape_cast %176 : vector<1x1x128xf32> to vector<1x128xf32>
    %178 = vector.broadcast %177 : vector<1x128xf32> to vector<8x128xf32>
    %179 = arith.addf %175, %178 : vector<8x128xf32>
    %c1_81 = arith.constant 1 : index
    %c0_82 = arith.constant 0 : index
    %c0_83 = arith.constant 0 : index
    %180 = vector.load %arg4[%c1_81, %c0_82, %c0_83] : memref<2x8x128xf32, #tpu.memory_space<vmem>>, vector<1x8x128xf32>
    %181 = vector.shape_cast %180 : vector<1x8x128xf32> to vector<8x128xf32>
    %182 = vector.shape_cast %179 : vector<8x128xf32> to vector<1x8x128xf32>
    tpu.vector_store %arg4[%c1_81, %c0_82, %c0_83], %182 {strides = array<i32>} : memref<2x8x128xf32, #tpu.memory_space<vmem>>, vector<1x8x128xf32>,
    return
  }
}

</mosaic_0001>

<bundles_post_ra>
// kernel: abstract_cvnet_forward.1
= control target key start
LH: loop header
LB: loop body
LE: loop exit
PB: predicated region body
PF: predicated region fallthrough
CT: control target
= control target key end

     0   :  { %9 = vsyncpa [#allocation3], 0  ;;  %s2125_s15 = smov [#allocation2]   ;;  %s2547_s0 = inlined_call_operand.vmem [shape: f32[2,8,4], index: 0, kind: input, shape index: {}]   ;;  %s2548_s1 = inlined_call_operand.hbm [shape: f32[8,64,64], index: 1, kind: input, shape index: {}]   ;;  %s2549_s2 = inlined_call_operand.vmem [shape: f32[5,1,64], index: 2, kind: input, shape index: {}]   ;;  %s2550_s3 = inlined_call_operand.vmem [shape: f32[2,1,128], index: 3, kind: input, shape index: {}]   ;;  %s2551_s4 = inlined_call_operand.vmem [shape: f32[2,8,128], index: 4, kind: output, shape index: {}]  }
   0x1   :  { %s17_s16 = sshll.u32 %s2125_s15, 4  ;;  %s18_s16 = int_to_ptr.vmem [resolvable:$true] %s17_s16 }
   0x2   :  { %s2111_s17 = scalar_lea.vmem %s18_s16, 8192  ;;  %p2116_p1 = scmp.lt.s32.totalorder %s18_s16, %s18_s16 }
   0x3   :  { %p2112_p0 = scmp.ne.s32.totalorder %s18_s16, %s2111_s17  ;;  %p2117_p2 = scmp.lt.s32.totalorder %s2111_s17, %s2111_s17 }
   0x5   :  { %p2118_p3 = por %p2117_p2, %p2116_p1 }
   0x7   :  { %p2119_p4 = pnand %p2118_p3, %p2112_p0 }
   0x9   :  { %2122 = shalt.err (!%p2119_p4)
}
   0xa   :  { %s2126_s18 = smov 128   ;;  %s2127_s19 = smov 8  }
   0xb   :  { %23 = dma.hbm_to_vmem [thread:$0]  %s2548_s1, 8192, %s18_s16, [#allocation3], %s2126_s18, %s2126_s18, %s2127_s19  }
   0xc   :  { %2123 = dma.done.wait [#allocation3], 8192  }
   0xd   :  { %2124 = vsyncadd [#allocation3], 4294959104  ;;  %v31_v0 = vlaneseq  ;;  %v2128_v1 = vmov 0.0   ;;  %vm2129_vm0 = vmmov 0   ;;  %vm52_vm3 = vcmask 1043456   ;;  %v47_v7 = vld [vmem:[%s2547_s0] sm:$0xff] }
   0xe   :  { %1845 = vmatprep.subr.mxu0 %v2128_v1  ;;  %1847 = vmatprep.mubr.msk.f32.mxu0 %vm2129_vm0, %v2128_v1  ;;  %vm48_vm6 = vcmask 31744   ;;  %v1653_v10 = vld [vmem:[%s2547_s0 + $0x8] sm:$0xff]  ;;  %v427_v11 = vld [vmem:[#allocation2 + $0x38] sm:$0xff]  ;;  %v426_v12 = vld [vmem:[#allocation2 + $0x30] sm:$0xff]  ;;  %v2130_v37 = vmov 683565275  }
   0xf   :  { %v2168_v2 = vand.u32 127, %v31_v0  ;;  %v2170_v3 = vshrl.u32 %v31_v0, 7  ;;  %1874 = vmatprep.subr.mxu1 %v2128_v1  ;;  %1890 = vmatprep.mubr.msk.f32.mxu1 %vm2129_vm0, %v2128_v1  ;;  %v425_v13 = vld [vmem:[#allocation2 + $0x28] sm:$0xff]  ;;  %v424_v14 = vld [vmem:[#allocation2 + $0x20] sm:$0xff]  ;;  %v423_v15 = vld [vmem:[#allocation2 + $0x18] sm:$0xff] }
  0x10   :  { %v422_v16 = vld [vmem:[#allocation2 + $0x10] sm:$0xff]  ;;  %v421_v17 = vld [vmem:[#allocation2 + $0x8] sm:$0xff]  ;;  %v420_v18 = vld [vmem:[#allocation2] sm:$0xff]  ;;  %v2131_v39 = vmov 2475754826  }
  0x11   :  { %vm41_vm1 = vcmp.eq.s32.totalorder %v2168_v2, %v2170_v3  ;;  %v2178_v4 = vadd.s32 8, %v2170_v3  ;;  %v127_v5 = vadd.s32 4, %v2170_v3  ;;  %vm35_vm9 = vcmp.ge.s32.totalorder %v2168_v2, 8 }
  0x12   :  { %vm36_vm10 = vcmp.lt.s32.totalorder %v2168_v2, 16  ;;  %v2132_v42 = vmov 2131351028   ;;  %v2133_v45 = vmov 2102212464  }
  0x13   :  { %vm43_vm2 = vcmp.eq.s32.totalorder %v2168_v2, %v2178_v4  ;;  %vm128_vm4 = vcmp.eq.s32.totalorder %v2168_v2, %v127_v5  ;;  %v129_v6 = vadd.s32 4, %v2178_v4  ;;  %vm37_vm11 = vmand %vm35_vm9, %vm36_vm10  ;;  %v2134_v48 = vmov 920167782  }
  0x14   :  { %vm44_vm5 = vmor %vm41_vm1, %vm43_vm2  ;;  %v1648_v19 = vsel %vm37_vm11, 1.0, %v2128_v1  ;;  %v2135_v51 = vmov 1326507024  }
  0x15   :  { %v1649_v8 = vsel %vm44_vm5, 1.0, %v2128_v1  ;;  %vm130_vm7 = vcmp.eq.s32.totalorder %v2168_v2, %v129_v6  ;;  %v40_v20 = vmul.f32 -1.5707964, %v1648_v19 }
  0x16   :  { %1846 = vmatpush3.msk.msra.mxu0 %vm52_vm3, %v1649_v8  ;;  %vm131_vm8 = vmor %vm128_vm4, %vm130_vm7  ;;  %vm435_vm7 = vcmask 523264  }
  0x17   :  { %1848 = vmatmul.mubr.msk.f32.vlgmr.msra.gmra.mxu0 %vm48_vm6, %v47_v7  ;;  %1850 = vmatprep.subr.mxu0 %v2128_v1  ;;  %v1652_v9 = vsel %vm131_vm8, 1.0, %v2128_v1 }
  0x18   :  { %1851 = vmatpush3.msk.msra.mxu0 %vm52_vm3, %v1652_v9  ;;  %1852 = vmatprep.mubr.msk.f32.mxu0 %vm2129_vm0, %v2128_v1 }
  0x19   :  { %1855 = vmatprep.subr.mxu0 %v2128_v1 }
  0x1b   :  { %1853 = vmatmul.mubr.msk.f32.vlgmr.msra.gmra.mxu0 %vm48_vm6, %v1653_v10 }
  0x1c   :  { %1871 = vmatprep.mubr.msk.f32.mxu0 %vm2129_vm0, %v2128_v1  ;;  %1856 = vmatpush3.msra.mxu0 %v427_v11 }
  0x1d   :  { %1857 = vmatprep.subr.mxu0 %v2128_v1 }
  0x1e   :  { %1858 = vmatpush3.msra.mxu0 %v426_v12 }
  0x1f   :  { %1859 = vmatprep.subr.mxu0 %v2128_v1 }
  0x20   :  { %1860 = vmatpush3.msra.mxu0 %v425_v13 }
  0x21   :  { %1861 = vmatprep.subr.mxu0 %v2128_v1 }
  0x22   :  { %1862 = vmatpush3.msra.mxu0 %v424_v14 }
  0x23   :  { %1863 = vmatprep.subr.mxu0 %v2128_v1 }
  0x24   :  { %1864 = vmatpush3.msra.mxu0 %v423_v15 }
  0x25   :  { %1865 = vmatprep.subr.mxu0 %v2128_v1 }
  0x26   :  { %1866 = vmatpush3.msra.mxu0 %v422_v16 }
  0x27   :  { %1867 = vmatprep.subr.mxu0 %v2128_v1 }
  0x28   :  { %1868 = vmatpush3.msra.mxu0 %v421_v17 }
  0x29   :  { %1869 = vmatprep.subr.mxu0 %v2128_v1 }
  0x2a   :  { %1870 = vmatpush3.msra.mxu0 %v420_v18 }
  0x2b   :  { %1893 = vmatprep.subr.mxu0 %v2128_v1 }
  0xd7   :  { %v122_v21 = vpop.f32.mrf.mxu0 }
  0xd8   :  { %v126_v23 = vadd.f32 %v122_v21, %v40_v20 }
  0xd9   :  { %v1849_v22 = vpop.f32.mrf.mxu0 }
  0xdb   :  { %v208_v24 = vpop.f32.mrf.mxu0 }
  0xdc   :  { %v2211_v25 = vadd.f32 %v208_v24, %v126_v23 }
  0xdd   :  { %v1854_v26 = vpop.f32.mrf.mxu0 }
  0xde   :  { %v216_v27 = vand.u32 2139095040, %v2211_v25  ;;  %v213_v31 = vand.u32 2147483647, %v2211_v25  ;;  %vm215_vm4 = vcmp.lt.s32.totalorder %v2211_v25, 0 }
  0xe0   :  { %v217_v28 = vshrl.u32 %v216_v27, 23  ;;  %v220_v34 = vand.u32 8388607, %v213_v31  ;;  %vm214_vm5 = vcmp.le.f32.partialorder %v213_v31, 0.7853982 }
  0xe2   :  { %v1656_v29 = vadd.s32 4294967169, %v217_v28  ;;  %v221_v53 = vor.u32 8388608, %v220_v34 }
  0xe4   :  { %v223_v30 = vadd.s32 1, %v1656_v29  ;;  %v261_v7 = vshll.u32 %v221_v53, 8 }
  0xe6   :  { %vm224_vm12 = vcmp.gt.s32.totalorder %v223_v30, 0 }
  0xe7   :  { %v225_v32 = vsel %vm224_vm12, %v223_v30, 0 }
  0xe8   :  { %v227_v33 = vand.u32 31, %v225_v32  ;;  %v226_v36 = vshrl.u32 %v225_v32, 5 }
  0xea   :  { %v228_v35 = vsub.s32 32, %v227_v33  ;;  %v230_v38 = vshll.u32 %v2130_v37, %v227_v33  ;;  %v233_v40 = vshll.u32 %v2131_v39, %v227_v33  ;;  %v236_v44 = vshll.u32 %v2132_v42, %v227_v33 }
  0xeb   :  { %v239_v47 = vshll.u32 %v2133_v45, %v227_v33  ;;  %v242_v50 = vshll.u32 %v2134_v48, %v227_v33  ;;  %vm245_vm13 = vcmp.lt.s32.totalorder %v226_v36, 1  ;;  %vm248_vm14 = vcmp.lt.s32.totalorder %v226_v36, 4 }
  0xec   :  { %v231_v41 = vshrl.u32 %v2131_v39, %v228_v35  ;;  %v234_v43 = vshrl.u32 %v2132_v42, %v228_v35  ;;  %v237_v46 = vshrl.u32 %v2133_v45, %v228_v35  ;;  %v240_v49 = vshrl.u32 %v2134_v48, %v228_v35 }
  0xed   :  { %v243_v52 = vshrl.u32 %v2135_v51, %v228_v35  ;;  %v229_v62 = vshrl.u32 %v2130_v37, %v228_v35  ;;  %vm247_vm15 = vcmp.lt.s32.totalorder %v226_v36, 3  ;;  %vm246_vm1 = vcmp.lt.s32.totalorder %v226_v36, 2 }
  0xee   :  { %v232_v54 = vor.u32 %v231_v41, %v230_v38  ;;  %v235_v55 = vor.u32 %v234_v43, %v233_v40  ;;  %v238_v56 = vor.u32 %v237_v46, %v236_v44  ;;  %v241_v57 = vor.u32 %v240_v49, %v239_v47 }
  0xef   :  { %v244_v58 = vor.u32 %v243_v52, %v242_v50 }
  0xf0   :  { %v250_v59 = vsel %vm248_vm14, %v238_v56, 2102212464  ;;  %v253_v60 = vsel %vm245_vm13, %v232_v54, %v235_v55  ;;  %v257_v61 = vsel %vm245_vm13, %v235_v55, %v238_v56  ;;  %v254_v63 = vsel %vm248_vm14, %v241_v57, 920167782 }
  0xf1   :  { %v258_v0 = vsel %vm248_vm14, %v244_v58, 1326507024  ;;  %v255_v5 = vsel %vm247_vm15, %v238_v56, %v254_v63  ;;  %v249_v8 = vsel %vm245_vm13, %v229_v62, %v232_v54  ;;  %v251_v9 = vsel %vm247_vm15, %v235_v55, %v250_v59 }
  0xf2   :  { %v259_v6 = vsel %vm247_vm15, %v241_v57, %v258_v0  ;;  %v256_v10 = vsel %vm246_vm1, %v253_v60, %v255_v5  ;;  %v252_v16 = vsel %vm246_vm1, %v249_v8, %v251_v9  ;;  %vm305_vm13 = vweird.f32 %v2211_v25  ;;  %v518_v0 = vld [vmem:[#allocation2 + $0x78] sm:$0xff]  ;;  %v517_v5 = vld [vmem:[#allocation2 + $0x70] sm:$0xff]  ;;  %v512_v9 = vld [vmem:[#allocation2 + $0x48] sm:$0xff] }
  0xf3   :  { %v260_v11 = vsel %vm246_vm1, %v257_v61, %v259_v6  ;;  %v2220_v14 = vmul.u32.u64.low %v261_v7, %v256_v10  ;;  %v2221_v15 = vmul.u32.u64.high %v261_v7, %v256_v10, %v2220_v14  ;;  %v268_v18 = vmul.u32 %v261_v7, %v252_v16  ;;  %1875 = vmatpush3.msra.mxu1 %v518_v0  ;;  %v516_v6 = vld [vmem:[#allocation2 + $0x68] sm:$0xff]  ;;  %v513_v8 = vld [vmem:[#allocation2 + $0x50] sm:$0xff]  ;;  %v511_v10 = vld [vmem:[#allocation2 + $0x40] sm:$0xff] }
  0xf4   :  { %v2217_v12 = vmul.u32.u64.low %v261_v7, %v260_v11  ;;  %v2218_v13 = vmul.u32.u64.high %v261_v7, %v260_v11, %v2217_v12  ;;  %1876 = vmatprep.subr.mxu1 %v2128_v1  ;;  %v514_v7 = vld [vmem:[#allocation2 + $0x58] sm:$0xff]  ;;  %v1664_v11 = vld [vmem:[%s2549_s2] ss:$0 sm:$0xff]  ;;  %vm1190_vm14 = vcmp.eq.s32.totalorder %v2168_v2, 4 }
  0xf5   :  { %v271_v17 = vadd.s32 1, %v2221_v15  ;;  %1877 = vmatpush3.msra.mxu1 %v517_v5  ;;  %v609_v16 = vld [vmem:[#allocation2 + $0xb8] sm:$0xff] }
  0xf6   :  { %vm270_vm2 = vc.u32 %v2218_v13, %v2220_v14  ;;  %v269_v32 = vadd.s32 %v2220_v14, %v2218_v13  ;;  %1878 = vmatprep.subr.mxu1 %v2128_v1 }
  0xf7   :  { %v272_v19 = vsel %vm270_vm2, %v271_v17, %v2221_v15  ;;  %1879 = vmatpush3.msra.mxu1 %v516_v6  ;;  %v608_v17 = vld [vmem:[#allocation2 + $0xb0] sm:$0xff] }
  0xf8   :  { %v273_v20 = vadd.s32 %v272_v19, %v268_v18  ;;  %1880 = vmatprep.subr.mxu1 %v2128_v1  ;;  %v607_v18 = vld [vmem:[#allocation2 + $0xa8] sm:$0xff]  ;;  %v606_v19 = vld [vmem:[#allocation2 + $0xa0] sm:$0xff] }
  0xfa   :  { %v274_v21 = vadd.s32 536870912, %v273_v20 }
  0xfc   :  { %v275_v22 = vshrl.u32 %v274_v21, 30  ;;  %v604_v21 = vld [vmem:[#allocation2 + $0x90] sm:$0xff] }
  0xfe   :  { %v276_v23 = vshll.u32 %v275_v22, 30  ;;  %v299_v45 = vsub.s32 4, %v275_v22 }
 0x100   :  { %v277_v24 = vsub.s32 %v273_v20, %v276_v23  ;;  %v300_v48 = vsel %vm215_vm4, %v299_v45, %v275_v22  ;;  %v605_v20 = vld [vmem:[#allocation2 + $0x98] sm:$0xff]  ;;  %v603_v22 = vld [vmem:[#allocation2 + $0x88] sm:$0xff]  ;;  %v602_v23 = vld [vmem:[#allocation2 + $0x80] sm:$0xff] }
 0x101   :  { %v302_v49 = vsel %vm214_vm5, 0, %v300_v48  ;;  %v802_v45 = vld [vmem:[#allocation2 + $0x1f0] sm:$0xff]  ;;  %v799_v48 = vld [vmem:[#allocation2 + $0x1d8] sm:$0xff] }
 0x102   :  { %v279_v26 = vsub.s32 0, %v277_v24  ;;  %v409_v50 = vadd.s32 3, %v302_v49  ;;  %v306_v51 = vand.u32 3, %v302_v49  ;;  %v798_v49 = vld [vmem:[#allocation2 + $0x1d0] sm:$0xff] }
 0x104   :  { %v1657_v27 = vmin.u32 %v279_v26, %v277_v24  ;;  %v410_v52 = vand.u32 3, %v409_v50  ;;  %vm311_vm6 = vcmp.eq.s32.totalorder %v306_v51, 2  ;;  %vm308_vm9 = vcmp.eq.s32.totalorder %v306_v51, 0  ;;  %v797_v50 = vld [vmem:[#allocation2 + $0x1c8] sm:$0xff] }
 0x105   :  { %vm307_vm11 = vcmp.lt.s32.totalorder %v306_v51, 2  ;;  %v796_v51 = vld [vmem:[#allocation2 + $0x1c0] sm:$0xff] }
 0x106   :  { %v281_v28 = vclz %v1657_v27  ;;  %vm415_vm8 = vcmp.eq.s32.totalorder %v410_v52, 2  ;;  %vm412_vm10 = vcmp.eq.s32.totalorder %v410_v52, 0  ;;  %vm411_vm12 = vcmp.lt.s32.totalorder %v410_v52, 2  ;;  %v888_v52 = vld [vmem:[#allocation2 + $0x1b8] sm:$0xff] }
 0x108   :  { %v1658_v29 = vadd.s32 4294967294, %v281_v28 }
 0x10a   :  { %vm1659_vm3 = vcmp.lt.s32.totalorder %v1658_v29, 0 }
 0x10b   :  { %v284_v30 = vsel %vm1659_vm3, 0, %v1658_v29 }
 0x10c   :  { %v285_v33 = vsub.s32 32, %v284_v30  ;;  %v289_v34 = vsub.s32 4294967266, %v284_v30  ;;  %v286_v35 = vshll.u32 %v277_v24, %v284_v30  ;;  %v1667_v24 = vld [vmem:[%s2549_s2 + $0x1] ss:$0 sm:$0xff]  ;;  %v700_v30 = vld [vmem:[#allocation2 + $0xf8] sm:$0xff] }
 0x10e   :  { %v287_v36 = vshrl.u32 %v269_v32, %v285_v33  ;;  %v290_v37 = vadd.s32 127, %v289_v34  ;;  %v699_v32 = vld [vmem:[#allocation2 + $0xf0] sm:$0xff]  ;;  %v698_v33 = vld [vmem:[#allocation2 + $0xe8] sm:$0xff]  ;;  %v697_v34 = vld [vmem:[#allocation2 + $0xe0] sm:$0xff] }
 0x110   :  { %v288_v38 = vor.u32 %v287_v36, %v286_v35  ;;  %v291_v39 = vshll.u32 %v290_v37, 23  ;;  %v696_v35 = vld [vmem:[#allocation2 + $0xd8] sm:$0xff]  ;;  %v695_v36 = vld [vmem:[#allocation2 + $0xd0] sm:$0xff]  ;;  %v694_v37 = vld [vmem:[#allocation2 + $0xc8] sm:$0xff] }
 0x112   :  { %v292_v40 = vor.u32 4788187, %v291_v39  ;;  %v295_v42 = vcvt.s32.f32 %v288_v38  ;;  %v693_v38 = vld [vmem:[#allocation2 + $0xc0] sm:$0xff] }
 0x113   :  { %v1670_v39 = vld [vmem:[%s2549_s2 + $0x2] ss:$0 sm:$0xff] }
 0x114   :  { %v293_v41 = vand.u32 2147483647, %v292_v40 }
 0x116   :  { %v296_v43 = vmul.f32 %v295_v42, %v293_v41 }
 0x118   :  { %v297_v44 = vxor.u32 2147483648, %v296_v43 }
 0x11a   :  { %v298_v46 = vsel %vm215_vm4, %v297_v44, %v296_v43  ;;  %v803_v44 = vld [vmem:[#allocation2 + $0x1f8] sm:$0xff] }
 0x11b   :  { %v301_v47 = vsel %vm214_vm5, %v2211_v25, %v298_v46  ;;  %v515_v25 = vld [vmem:[#allocation2 + $0x60] sm:$0xff]  ;;  %v801_v46 = vld [vmem:[#allocation2 + $0x1e8] sm:$0xff]  ;;  %vm1165_vm5 = vcmp.lt.s32.totalorder %v2168_v2, 4 }
 0x11c   :  { %2091 = vcosq.f32 %v301_v47  ;;  %1881 = vmatpush3.msra.mxu1 %v515_v25 }
 0x11d   :  { %2093 = vsinq.f32 %v301_v47  ;;  %1882 = vmatprep.subr.mxu1 %v2128_v1  ;;  %v800_v47 = vld [vmem:[#allocation2 + $0x1e0] sm:$0xff] }
 0x11e   :  { %1883 = vmatpush3.msra.mxu1 %v514_v7  ;;  %v882_v7 = vld [vmem:[#allocation2 + $0x188] sm:$0xff] }
 0x11f   :  { %1884 = vmatprep.subr.mxu1 %v2128_v1 }
 0x120   :  { %1885 = vmatpush3.msra.mxu1 %v513_v8  ;;  %v881_v8 = vld [vmem:[#allocation2 + $0x180] sm:$0xff] }
 0x121   :  { %1886 = vmatprep.subr.mxu1 %v2128_v1 }
 0x122   :  { %1887 = vmatpush3.msra.mxu1 %v512_v9  ;;  %v973_v9 = vld [vmem:[#allocation2 + $0x178] sm:$0xff] }
 0x123   :  { %1888 = vmatprep.subr.mxu1 %v2128_v1 }
 0x124   :  { %1889 = vmatpush3.msra.mxu1 %v511_v10  ;;  %v972_v10 = vld [vmem:[#allocation2 + $0x170] sm:$0xff] }
 0x125   :  { %1912 = vmatprep.subr.mxu1 %v2128_v1 }
 0x129   :  { %v2092_v53 = vpop.eup %2091 }
 0x12a   :  { %v2094_v54 = vpop.eup %2093  ;;  %v312_v55 = vxor.u32 2147483648, %v2092_v53 }
 0x12b   :  { %v309_v56 = vxor.u32 2147483648, %v2094_v54 }
 0x12c   :  { %v313_v57 = vsel %vm311_vm6, %v312_v55, %v2094_v54  ;;  %v417_v31 = vsel %vm415_vm8, %v312_v55, %v2094_v54  ;;  %v886_v54 = vld [vmem:[#allocation2 + $0x1a8] sm:$0xff]  ;;  %v885_v55 = vld [vmem:[#allocation2 + $0x1a0] sm:$0xff] }
 0x12d   :  { %v310_v58 = vsel %vm308_vm9, %v2092_v53, %v309_v56  ;;  %v414_v59 = vsel %vm412_vm10, %v2092_v53, %v309_v56  ;;  %v887_v53 = vld [vmem:[#allocation2 + $0x1b0] sm:$0xff]  ;;  %v884_v56 = vld [vmem:[#allocation2 + $0x198] sm:$0xff] }
 0x12e   :  { %v314_v60 = vsel %vm307_vm11, %v310_v58, %v313_v57  ;;  %v418_v61 = vsel %vm411_vm12, %v414_v59, %v417_v31  ;;  %v883_v57 = vld [vmem:[#allocation2 + $0x190] sm:$0xff]  ;;  %v1673_v31 = vld [vmem:[%s2549_s2 + $0x3] ss:$0 sm:$0xff] }
 0x12f   :  { %v315_v62 = vsel %vm305_vm13, nan, %v314_v60  ;;  %v2232_v63 = vsel %vm305_vm13, nan, %v418_v61  ;;  %v1676_v61 = vld [vmem:[%s2549_s2 + $0x4] ss:$0 sm:$0xff] }
 0x130   :  { %1872 = vmatmul.mubr.msk.f32.vlgmr.msra.gmra.mxu0 %vm435_vm7, %v315_v62 }
 0x131   :  { %1909 = vmatprep.mubr.msk.f32.mxu0 %vm2129_vm0, %v2128_v1  ;;  %1894 = vmatpush3.msra.mxu0 %v609_v16  ;;  %v967_v16 = vld [vmem:[#allocation2 + $0x148] sm:$0xff] }
 0x132   :  { %1895 = vmatprep.subr.mxu0 %v2128_v1 }
 0x133   :  { %1896 = vmatpush3.msra.mxu0 %v608_v17 }
 0x134   :  { %1897 = vmatprep.subr.mxu0 %v2128_v1 }
 0x135   :  { %1898 = vmatpush3.msra.mxu0 %v607_v18 }
 0x136   :  { %1899 = vmatprep.subr.mxu0 %v2128_v1 }
 0x137   :  { %1900 = vmatpush3.msra.mxu0 %v606_v19 }
 0x138   :  { %1901 = vmatprep.subr.mxu0 %v2128_v1 }
 0x139   :  { %1902 = vmatpush3.msra.mxu0 %v605_v20 }
 0x13a   :  { %1903 = vmatprep.subr.mxu0 %v2128_v1 }
 0x13b   :  { %1904 = vmatpush3.msra.mxu0 %v604_v21 }
 0x13c   :  { %1905 = vmatprep.subr.mxu0 %v2128_v1 }
 0x13d   :  { %1906 = vmatpush3.msra.mxu0 %v603_v22  ;;  %v966_v22 = vld [vmem:[#allocation2 + $0x140] sm:$0xff] }
 0x13e   :  { %1907 = vmatprep.subr.mxu0 %v2128_v1 }
 0x13f   :  { %1908 = vmatpush3.msra.mxu0 %v602_v23  ;;  %v1058_v23 = vld [vmem:[#allocation2 + $0x138] sm:$0xff] }
 0x140   :  { %1931 = vmatprep.subr.mxu0 %v2128_v1 }
 0x1f0   :  { %v505_v12 = vpop.f32.mrf.mxu0 }
 0x1f1   :  { %v506_v13 = vadd.f32 %v1664_v11, %v505_v12  ;;  %v971_v11 = vld [vmem:[#allocation2 + $0x168] sm:$0xff]  ;;  %v970_v12 = vld [vmem:[#allocation2 + $0x160] sm:$0xff] }
 0x1f2   :  { %v1873_v14 = vpop.f32.mrf.mxu0 }
 0x1f3   :  { %2095 = vtanh.f32 %v506_v13  ;;  %v969_v13 = vld [vmem:[#allocation2 + $0x158] sm:$0xff]  ;;  %v968_v14 = vld [vmem:[#allocation2 + $0x150] sm:$0xff] }
 0x200   :  { %v2248_v15 = vpop.eup %2095 }
 0x201   :  { %1891 = vmatmul.mubr.msk.f32.vlgmr.msra.gmra.mxu1 %vm435_vm7, %v2248_v15 }
 0x202   :  { %1928 = vmatprep.mubr.msk.f32.mxu1 %vm2129_vm0, %v2128_v1  ;;  %1913 = vmatpush3.msra.mxu1 %v700_v30  ;;  %v1053_v30 = vld [vmem:[#allocation2 + $0x110] sm:$0xff] }
 0x203   :  { %1914 = vmatprep.subr.mxu1 %v2128_v1 }
 0x204   :  { %1915 = vmatpush3.msra.mxu1 %v699_v32 }
 0x205   :  { %1916 = vmatprep.subr.mxu1 %v2128_v1 }
 0x206   :  { %1917 = vmatpush3.msra.mxu1 %v698_v33 }
 0x207   :  { %1918 = vmatprep.subr.mxu1 %v2128_v1 }
 0x208   :  { %1919 = vmatpush3.msra.mxu1 %v697_v34 }
 0x209   :  { %1920 = vmatprep.subr.mxu1 %v2128_v1 }
 0x20a   :  { %1921 = vmatpush3.msra.mxu1 %v696_v35 }
 0x20b   :  { %1922 = vmatprep.subr.mxu1 %v2128_v1 }
 0x20c   :  { %1923 = vmatpush3.msra.mxu1 %v695_v36 }
 0x20d   :  { %1924 = vmatprep.subr.mxu1 %v2128_v1 }
 0x20e   :  { %1925 = vmatpush3.msra.mxu1 %v694_v37  ;;  %v2136_v37 = vmov 1.0  }
 0x20f   :  { %1926 = vmatprep.subr.mxu1 %v2128_v1 }
 0x210   :  { %1927 = vmatpush3.msra.mxu1 %v693_v38  ;;  %v1051_v38 = vld [vmem:[#allocation2 + $0x100] sm:$0xff] }
 0x211   :  { %1950 = vmatprep.subr.mxu1 %v2128_v1 }
 0x2c1   :  { %v596_v26 = vpop.f32.mrf.mxu1 }
 0x2c2   :  { %v597_v27 = vadd.f32 %v1667_v24, %v596_v26  ;;  %v1057_v24 = vld [vmem:[#allocation2 + $0x130] sm:$0xff]  ;;  %v1056_v26 = vld [vmem:[#allocation2 + $0x128] sm:$0xff] }
 0x2c3   :  { %v1892_v28 = vpop.f32.mrf.mxu1 }
 0x2c4   :  { %2097 = vtanh.f32 %v597_v27  ;;  %v1055_v27 = vld [vmem:[#allocation2 + $0x120] sm:$0xff]  ;;  %v1054_v28 = vld [vmem:[#allocation2 + $0x118] sm:$0xff] }
 0x2d1   :  { %v2265_v29 = vpop.eup %2097 }
 0x2d2   :  { %1910 = vmatmul.mubr.msk.f32.vlgmr.msra.gmra.mxu0 %vm435_vm7, %v2265_v29  ;;  %v962_v32 = vmul.f32 %v2265_v29, %v2265_v29  ;;  %v1052_v29 = vld [vmem:[#allocation2 + $0x108] sm:$0xff] }
 0x2d3   :  { %1947 = vmatprep.mubr.msk.f32.mxu0 %vm2129_vm0, %v2128_v1  ;;  %1932 = vmatpush3.msra.mxu0 %v803_v44  ;;  %v2410_v44 = vadd.s32 32, %v2170_v3 }
 0x2d4   :  { %1933 = vmatprep.subr.mxu0 %v2128_v1  ;;  %v963_v33 = vsub.f32 1.0, %v962_v32 }
 0x2d5   :  { %1934 = vmatpush3.msra.mxu0 %v802_v45  ;;  %v2418_v45 = vadd.s32 24, %v2170_v3  ;;  %vm1144_vm11 = vcmp.eq.s32.totalorder %v2410_v44, %v2168_v2 }
 0x2d6   :  { %1935 = vmatprep.subr.mxu0 %v2128_v1 }
 0x2d7   :  { %1936 = vmatpush3.msra.mxu0 %v801_v46 }
 0x2d8   :  { %1937 = vmatprep.subr.mxu0 %v2128_v1 }
 0x2d9   :  { %1938 = vmatpush3.msra.mxu0 %v800_v47 }
 0x2da   :  { %1939 = vmatprep.subr.mxu0 %v2128_v1 }
 0x2db   :  { %1940 = vmatpush3.msra.mxu0 %v799_v48  ;;  %v2427_v48 = vadd.s32 16, %v2170_v3 }
 0x2dc   :  { %1941 = vmatprep.subr.mxu0 %v2128_v1 }
 0x2dd   :  { %1942 = vmatpush3.msra.mxu0 %v798_v49 }
 0x2de   :  { %1943 = vmatprep.subr.mxu0 %v2128_v1 }
 0x2df   :  { %1944 = vmatpush3.msra.mxu0 %v797_v50 }
 0x2e0   :  { %1945 = vmatprep.subr.mxu0 %v2128_v1 }
 0x2e1   :  { %1946 = vmatpush3.msra.mxu0 %v796_v51 }
 0x2e2   :  { %1969 = vmatprep.subr.mxu0 %v2128_v1 }
 0x392   :  { %v687_v40 = vpop.f32.mrf.mxu0 }
 0x393   :  { %v688_v41 = vadd.f32 %v1670_v39, %v687_v40  ;;  %v2388_v39 = vadd.s32 56, %v2170_v3  ;;  %v2391_v40 = vadd.s32 8, %v2168_v2 }
 0x394   :  { %v1911_v42 = vpop.f32.mrf.mxu0 }
 0x395   :  { %2099 = vtanh.f32 %v688_v41  ;;  %v2394_v41 = vadd.s32 48, %v2170_v3  ;;  %v1047_v42 = vmul.f32 %v2248_v15, %v2248_v15  ;;  %vm1147_vm15 = vcmp.eq.s32.totalorder %v2388_v39, %v2168_v2 }
 0x396   :  { %vm1156_vm1 = vcmp.eq.s32.totalorder %v2388_v39, %v2391_v40  ;;  %vm1153_vm12 = vcmp.eq.s32.totalorder %v2410_v44, %v2391_v40 }
 0x397   :  { %vm1146_vm2 = vcmp.eq.s32.totalorder %v2394_v41, %v2168_v2  ;;  %vm1155_vm3 = vcmp.eq.s32.totalorder %v2394_v41, %v2391_v40  ;;  %vm1164_vm4 = vmor %vm1147_vm15, %vm1156_vm1  ;;  %v1048_v15 = vsub.f32 1.0, %v1047_v42  ;;  %vm1143_vm15 = vcmp.eq.s32.totalorder %v2418_v45, %v2168_v2 }
 0x398   :  { %vm1163_vm9 = vmor %vm1146_vm2, %vm1155_vm3  ;;  %vm1152_vm1 = vcmp.eq.s32.totalorder %v2418_v45, %v2391_v40 }
 0x399   :  { %vm1173_vm10 = vmand %vm1164_vm4, %vm1165_vm5  ;;  %vm1142_vm4 = vcmp.eq.s32.totalorder %v2427_v48, %v2168_v2 }
 0x39a   :  { %vm1161_vm2 = vmor %vm1144_vm11, %vm1153_vm12 }
 0x3a2   :  { %v2282_v43 = vpop.eup %2099 }
 0x3a3   :  { %1929 = vmatmul.mubr.msk.f32.vlgmr.msra.gmra.mxu1 %vm435_vm7, %v2282_v43  ;;  %v877_v17 = vmul.f32 %v2282_v43, %v2282_v43  ;;  %v2403_v43 = vadd.s32 40, %v2170_v3 }
 0x3a4   :  { %1966 = vmatprep.mubr.msk.f32.mxu1 %vm2129_vm0, %v2128_v1  ;;  %1951 = vmatpush3.msra.mxu1 %v888_v52 }
 0x3a5   :  { %1952 = vmatprep.subr.mxu1 %v2128_v1  ;;  %v878_v18 = vsub.f32 1.0, %v877_v17  ;;  %vm1145_vm6 = vcmp.eq.s32.totalorder %v2403_v43, %v2168_v2  ;;  %vm1154_vm8 = vcmp.eq.s32.totalorder %v2403_v43, %v2391_v40 }
 0x3a6   :  { %1953 = vmatpush3.msra.mxu1 %v887_v53  ;;  %vm1162_vm13 = vmor %vm1145_vm6, %vm1154_vm8  ;;  %vm1151_vm6 = vcmp.eq.s32.totalorder %v2427_v48, %v2391_v40 }
 0x3a7   :  { %1954 = vmatprep.subr.mxu1 %v2128_v1  ;;  %vm1171_vm3 = vmand %vm1162_vm13, %vm1165_vm5  ;;  %vm1141_vm13 = vcmp.eq.s32.totalorder %v2178_v4, %v2168_v2 }
 0x3a8   :  { %1955 = vmatpush3.msra.mxu1 %v886_v54  ;;  %vm1160_vm8 = vmor %vm1143_vm15, %vm1152_vm1  ;;  %v1394_v54 = vadd.s32 4, %v2168_v2 }
 0x3a9   :  { %1956 = vmatprep.subr.mxu1 %v2128_v1  ;;  %vm1169_vm11 = vmand %vm1160_vm8, %vm1165_vm5 }
 0x3aa   :  { %1957 = vmatpush3.msra.mxu1 %v885_v55  ;;  %v1403_v55 = vadd.s32 4, %v2391_v40  ;;  %vm1401_vm8 = vcmp.eq.s32.totalorder %v2394_v41, %v1394_v54 }
 0x3ab   :  { %1958 = vmatprep.subr.mxu1 %v2128_v1 }
 0x3ac   :  { %1959 = vmatpush3.msra.mxu1 %v884_v56 }
 0x3ad   :  { %1960 = vmatprep.subr.mxu1 %v2128_v1 }
 0x3ae   :  { %1961 = vmatpush3.msra.mxu1 %v883_v57 }
 0x3af   :  { %1962 = vmatprep.subr.mxu1 %v2128_v1 }
 0x3b0   :  { %1963 = vmatpush3.msra.mxu1 %v882_v7 }
 0x3b1   :  { %1964 = vmatprep.subr.mxu1 %v2128_v1 }
 0x3b2   :  { %1965 = vmatpush3.msra.mxu1 %v881_v8 }
 0x3b3   :  { %1988 = vmatprep.subr.mxu1 %v2128_v1 }
 0x463   :  { %v778_v58 = vpop.f32.mrf.mxu1 }
 0x464   :  { %v779_v59 = vadd.f32 %v1673_v31, %v778_v58 }
 0x465   :  { %v1930_v60 = vpop.f32.mrf.mxu1 }
 0x466   :  { %2101 = vtanh.f32 %v779_v59 }
 0x473   :  { %v2102_v62 = vpop.eup %2101 }
 0x474   :  { %v792_v0 = vmul.f32 %v2102_v62, %v2102_v62  ;;  %v2308_v5 = vmul.f32 %v2102_v62, %v1676_v61 }
 0x476   :  { %v793_v6 = vsub.f32 1.0, %v792_v0 }
 0x478   :  { %v794_v25 = vmul.f32 %v1676_v61, %v793_v6 }
 0x47a   :  { %1948 = vmatmul.mubr.msk.f32.vlgmr.msra.gmra.mxu0 %vm435_vm7, %v794_v25 }
 0x47b   :  { %1985 = vmatprep.mubr.msk.f32.mxu0 %vm2129_vm0, %v2128_v1  ;;  %1970 = vmatpush3.msra.mxu0 %v973_v9 }
 0x47c   :  { %1971 = vmatprep.subr.mxu0 %v2128_v1 }
 0x47d   :  { %1972 = vmatpush3.msra.mxu0 %v972_v10 }
 0x47e   :  { %1973 = vmatprep.subr.mxu0 %v2128_v1 }
 0x47f   :  { %1974 = vmatpush3.msra.mxu0 %v971_v11 }
 0x480   :  { %1975 = vmatprep.subr.mxu0 %v2128_v1 }
 0x481   :  { %1976 = vmatpush3.msra.mxu0 %v970_v12 }
 0x482   :  { %1977 = vmatprep.subr.mxu0 %v2128_v1 }
 0x483   :  { %1978 = vmatpush3.msra.mxu0 %v969_v13 }
 0x484   :  { %1979 = vmatprep.subr.mxu0 %v2128_v1 }
 0x485   :  { %1980 = vmatpush3.msra.mxu0 %v968_v14 }
 0x486   :  { %1981 = vmatprep.subr.mxu0 %v2128_v1 }
 0x487   :  { %1982 = vmatpush3.msra.mxu0 %v967_v16 }
 0x488   :  { %1983 = vmatprep.subr.mxu0 %v2128_v1 }
 0x489   :  { %1984 = vmatpush3.msra.mxu0 %v966_v22 }
 0x48a   :  { %2007 = vmatprep.subr.mxu0 %v2128_v1 }
 0x53a   :  { %v873_v19 = vpop.f32.mrf.mxu0 }
 0x53b   :  { %v879_v20 = vmul.f32 %v878_v18, %v873_v19 }
 0x53c   :  { %v1949_v21 = vpop.f32.mrf.mxu0 }
 0x53d   :  { %1967 = vmatmul.mubr.msk.f32.vlgmr.msra.gmra.mxu1 %vm435_vm7, %v879_v20 }
 0x53e   :  { %2004 = vmatprep.mubr.msk.f32.mxu1 %vm2129_vm0, %v2128_v1  ;;  %1989 = vmatpush3.msra.mxu1 %v1058_v23 }
 0x53f   :  { %1990 = vmatprep.subr.mxu1 %v2128_v1 }
 0x540   :  { %1991 = vmatpush3.msra.mxu1 %v1057_v24 }
 0x541   :  { %1992 = vmatprep.subr.mxu1 %v2128_v1 }
 0x542   :  { %1993 = vmatpush3.msra.mxu1 %v1056_v26 }
 0x543   :  { %1994 = vmatprep.subr.mxu1 %v2128_v1 }
 0x544   :  { %1995 = vmatpush3.msra.mxu1 %v1055_v27 }
 0x545   :  { %1996 = vmatprep.subr.mxu1 %v2128_v1 }
 0x546   :  { %1997 = vmatpush3.msra.mxu1 %v1054_v28 }
 0x547   :  { %1998 = vmatprep.subr.mxu1 %v2128_v1 }
 0x548   :  { %1999 = vmatpush3.msra.mxu1 %v1053_v30 }
 0x549   :  { %2000 = vmatprep.subr.mxu1 %v2128_v1 }
 0x54a   :  { %2001 = vmatpush3.msra.mxu1 %v1052_v29 }
 0x54b   :  { %2002 = vmatprep.subr.mxu1 %v2128_v1 }
 0x54c   :  { %2003 = vmatpush3.msra.mxu1 %v1051_v38 }
 0x54d   :  { %2018 = vmatprep.subr.mxu1 %v2128_v1 }
 0x5fd   :  { %v958_v34 = vpop.f32.mrf.mxu1 }
 0x5fe   :  { %v964_v35 = vmul.f32 %v963_v33, %v958_v34 }
 0x5ff   :  { %v1968_v36 = vpop.f32.mrf.mxu1 }
 0x600   :  { %1986 = vmatmul.mubr.msk.f32.vlgmr.msra.gmra.mxu0 %vm435_vm7, %v964_v35 }
 0x601   :  { %2008 = vmatpush3.msk.msra.mxu0 %vm1190_vm14, %v2136_v37  ;;  %2015 = vmatprep.mubr.msk.f32.mxu0 %vm2129_vm0, %v2128_v1 }
 0x602   :  { %2009 = vmatprep.subr.mxu0 %v2128_v1 }
 0x603   :  { %2010 = vmatpush3.msk.msra.mxu0 %vm1190_vm14, %v2136_v37 }
 0x604   :  { %2011 = vmatprep.subr.mxu0 %v2128_v1 }
 0x605   :  { %2012 = vmatpush3.msk.msra.mxu0 %vm1190_vm14, %v2136_v37 }
 0x606   :  { %2013 = vmatprep.subr.mxu0 %v2128_v1 }
 0x607   :  { %2014 = vmatpush3.msk.msra.mxu0 %vm1190_vm14, %v2136_v37 }
 0x608   :  { %2016 = vmatmul.mubr.msk.f32.vlgmr.msra.gmra.mxu0 %vm435_vm7, %v2308_v5  ;;  %2037 = vmatprep.subr.mxu0 %v2128_v1 }
 0x609   :  { %2038 = vmatpush3.msk.msra.mxu0 %vm1190_vm14, %v2136_v37  ;;  %2053 = vmatprep.mubr.msk.f32.mxu0 %vm2129_vm0, %v2128_v1 }
 0x60a   :  { %2039 = vmatprep.subr.mxu0 %v2128_v1 }
 0x60b   :  { %2040 = vmatpush3.msk.msra.mxu0 %vm1190_vm14, %v2136_v37 }
 0x60c   :  { %2041 = vmatprep.subr.mxu0 %v2128_v1 }
 0x60d   :  { %2042 = vmatpush3.msk.msra.mxu0 %vm1190_vm14, %v2136_v37 }
 0x60e   :  { %2043 = vmatprep.subr.mxu0 %v2128_v1 }
 0x60f   :  { %2044 = vmatpush3.msk.msra.mxu0 %vm1190_vm14, %v2136_v37  ;;  %vm1172_vm14 = vmand %vm1163_vm9, %vm1165_vm5 }
 0x610   :  { %2045 = vmatprep.subr.mxu0 %v2128_v1  ;;  %vm1170_vm9 = vmand %vm1161_vm2, %vm1165_vm5  ;;  %vm1140_vm2 = vcmp.eq.s32.totalorder %v2170_v3, %v2168_v2 }
 0x611   :  { %2046 = vmatpush3.msra.mxu0 %v2128_v1 }
 0x612   :  { %2047 = vmatprep.subr.mxu0 %v2128_v1 }
 0x613   :  { %2048 = vmatpush3.msra.mxu0 %v2128_v1 }
 0x614   :  { %2049 = vmatprep.subr.mxu0 %v2128_v1 }
 0x615   :  { %2050 = vmatpush3.msra.mxu0 %v2128_v1 }
 0x616   :  { %2051 = vmatprep.subr.mxu0 %v2128_v1 }
 0x617   :  { %2052 = vmatpush3.msra.mxu0 %v2128_v1 }
 0x618   :  { %2054 = vmatmul.mubr.msk.f32.vlgmr.msra.gmra.mxu0 %vm435_vm7, %v2308_v5 }
 0x6c0   :  { %v1043_v46 = vpop.f32.mrf.mxu0 }
 0x6c1   :  { %v1049_v47 = vmul.f32 %v1048_v15, %v1043_v46 }
 0x6c2   :  { %v1987_v49 = vpop.f32.mrf.mxu0 }
 0x6c3   :  { %2005 = vmatmul.mubr.msk.f32.vlgmr.msra.gmra.mxu1 %vm435_vm7, %v1049_v47 }
 0x6c4   :  { %2019 = vmatpush3.msk.msra.mxu1 %vm1173_vm10, %v2136_v37  ;;  %2034 = vmatprep.mubr.msk.f32.mxu1 %vm2129_vm0, %v2128_v1  ;;  %vm1159_vm10 = vmor %vm1142_vm4, %vm1151_vm6  ;;  %vm1402_vm4 = vcmp.eq.s32.totalorder %v2388_v39, %v1394_v54  ;;  %vm1411_vm6 = vcmp.eq.s32.totalorder %v2388_v39, %v1403_v55 }
 0x6c5   :  { %2020 = vmatprep.subr.mxu1 %v2128_v1  ;;  %vm1168_vm12 = vmand %vm1159_vm10, %vm1165_vm5 }
 0x6c6   :  { %2021 = vmatpush3.msk.msra.mxu1 %vm1172_vm14, %v2136_v37  ;;  %vm1150_vm14 = vcmp.eq.s32.totalorder %v2178_v4, %v2391_v40  ;;  %vm1419_vm10 = vmor %vm1402_vm4, %vm1411_vm6  ;;  %vm1398_vm4 = vcmp.eq.s32.totalorder %v2418_v45, %v1394_v54  ;;  %vm1407_vm6 = vcmp.eq.s32.totalorder %v2418_v45, %v1403_v55 }
 0x6c7   :  { %2022 = vmatprep.subr.mxu1 %v2128_v1  ;;  %vm1158_vm15 = vmor %vm1141_vm13, %vm1150_vm14 }
 0x6c8   :  { %v2450_v50 = vpop.f32.mrf.mxu0  ;;  %2023 = vmatpush3.msk.msra.mxu1 %vm1171_vm3, %v2136_v37  ;;  %vm1167_vm1 = vmand %vm1158_vm15, %vm1165_vm5  ;;  %vm1399_vm15 = vcmp.eq.s32.totalorder %v2410_v44, %v1394_v54 }
 0x6c9   :  { %2024 = vmatprep.subr.mxu1 %v2128_v1  ;;  %vm1166_vm3 = vmand %vm1140_vm2, %vm1165_vm5 }
 0x6ca   :  { %v2017_v51 = vpop.f32.mrf.mxu0  ;;  %2025 = vmatpush3.msk.msra.mxu1 %vm1170_vm9, %v2136_v37  ;;  %vm1410_vm9 = vcmp.eq.s32.totalorder %v2394_v41, %v1403_v55  ;;  %vm1427_vm14 = vmand %vm1419_vm10, %vm1165_vm5  ;;  %vm1397_vm10 = vcmp.eq.s32.totalorder %v2427_v48, %v1394_v54 }
 0x6cb   :  { %2026 = vmatprep.subr.mxu1 %v2128_v1  ;;  %vm1418_vm13 = vmor %vm1401_vm8, %vm1410_vm9 }
 0x6cc   :  { %2027 = vmatpush3.msk.msra.mxu1 %vm1169_vm11, %v2136_v37  ;;  %vm1400_vm11 = vcmp.eq.s32.totalorder %v2403_v43, %v1394_v54 }
 0x6cd   :  { %2028 = vmatprep.subr.mxu1 %v2128_v1 }
 0x6ce   :  { %2029 = vmatpush3.msk.msra.mxu1 %vm1168_vm12, %v2136_v37  ;;  %vm1409_vm12 = vcmp.eq.s32.totalorder %v2403_v43, %v1403_v55 }
 0x6cf   :  { %2030 = vmatprep.subr.mxu1 %v2128_v1  ;;  %vm1417_vm2 = vmor %vm1400_vm11, %vm1409_vm12  ;;  %vm1406_vm11 = vcmp.eq.s32.totalorder %v2427_v48, %v1403_v55 }
 0x6d0   :  { %2031 = vmatpush3.msk.msra.mxu1 %vm1167_vm1, %v2136_v37  ;;  %vm1408_vm1 = vcmp.eq.s32.totalorder %v2410_v44, %v1403_v55  ;;  %vm1425_vm9 = vmand %vm1417_vm2, %vm1165_vm5 }
 0x6d1   :  { %2032 = vmatprep.subr.mxu1 %v2128_v1  ;;  %vm1416_vm8 = vmor %vm1399_vm15, %vm1408_vm1 }
 0x6d2   :  { %2033 = vmatpush3.msk.msra.mxu1 %vm1166_vm3, %v2136_v37  ;;  %vm1426_vm3 = vmand %vm1418_vm13, %vm1165_vm5 }
 0x6d3   :  { %2056 = vmatprep.subr.mxu1 %v2128_v1  ;;  %vm1415_vm12 = vmor %vm1398_vm4, %vm1407_vm6  ;;  %vm1395_vm4 = vcmp.eq.s32.totalorder %v2170_v3, %v1394_v54 }
 0x6d4   :  { %vm1424_vm13 = vmand %vm1416_vm8, %vm1165_vm5 }
 0x6d5   :  { %vm1414_vm15 = vmor %vm1397_vm10, %vm1406_vm11 }
 0x6d6   :  { %vm1423_vm1 = vmand %vm1415_vm12, %vm1165_vm5 }
 0x6d7   :  { %vm1420_vm8 = vmand %vm1395_vm4, %vm1165_vm5 }
 0x6d8   :  { %v2464_v52 = vpop.f32.mrf.mxu0 }
 0x6da   :  { %v2055_v53 = vpop.f32.mrf.mxu0 }
 0x783   :  { %v1128_v56 = vpop.f32.mrf.mxu1 }
 0x784   :  { %v1132_v57 = vmul.f32 %v1128_v56, %v2232_v63 }
 0x785   :  { %v2006_v31 = vpop.f32.mrf.mxu1 }
 0x786   :  { %v1133_v58 = vsub.f32 0.0, %v1132_v57 }
 0x788   :  { %2035 = vmatmul.mubr.msk.f32.vlgmr.msra.gmra.mxu1 %vm435_vm7, %v1133_v58 }
 0x789   :  { %2057 = vmatpush3.msk.msra.mxu1 %vm1427_vm14, %v2136_v37  ;;  %2072 = vmatprep.mubr.msk.f32.mxu1 %vm2129_vm0, %v2128_v1  ;;  %vm1396_vm14 = vcmp.eq.s32.totalorder %v2178_v4, %v1394_v54  ;;  %vm1405_vm0 = vcmp.eq.s32.totalorder %v2178_v4, %v1403_v55  ;;  %v1707_v4 = vld [vmem:[%s2550_s3] ss:$0 sm:$0xff] }
 0x78a   :  { %2058 = vmatprep.subr.mxu1 %v2128_v1  ;;  %vm1413_vm2 = vmor %vm1396_vm14, %vm1405_vm0 }
 0x78b   :  { %2059 = vmatpush3.msk.msra.mxu1 %vm1426_vm3, %v2136_v37  ;;  %vm1422_vm3 = vmand %vm1414_vm15, %vm1165_vm5 }
 0x78c   :  { %2060 = vmatprep.subr.mxu1 %v2128_v1  ;;  %vm1421_vm6 = vmand %vm1413_vm2, %vm1165_vm5 }
 0x78d   :  { %2061 = vmatpush3.msk.msra.mxu1 %vm1425_vm9, %v2136_v37 }
 0x78e   :  { %2062 = vmatprep.subr.mxu1 %v2128_v1 }
 0x78f   :  { %2063 = vmatpush3.msk.msra.mxu1 %vm1424_vm13, %v2136_v37 }
 0x790   :  { %2064 = vmatprep.subr.mxu1 %v2128_v1 }
 0x791   :  { %2065 = vmatpush3.msk.msra.mxu1 %vm1423_vm1, %v2136_v37 }
 0x792   :  { %2066 = vmatprep.subr.mxu1 %v2128_v1 }
 0x793   :  { %2067 = vmatpush3.msk.msra.mxu1 %vm1422_vm3, %v2136_v37 }
 0x794   :  { %2068 = vmatprep.subr.mxu1 %v2128_v1 }
 0x795   :  { %2069 = vmatpush3.msk.msra.mxu1 %vm1421_vm6, %v2136_v37 }
 0x796   :  { %2070 = vmatprep.subr.mxu1 %v2128_v1  ;;  %v1735_v1 = vld [vmem:[%s2550_s3 + $0x1] ss:$0 sm:$0xff] }
 0x797   :  { %2071 = vmatpush3.msk.msra.mxu1 %vm1420_vm8, %v2136_v37 }
 0x798   :  { %2073 = vmatmul.mubr.msk.f32.vlgmr.msra.gmra.mxu1 %vm435_vm7, %v1133_v58 }
 0x848   :  { %v1381_v3 = vpop.f32.mrf.mxu1 }
 0x849   :  { %v1382_v63 = vadd.f32 %v1381_v3, %v2450_v50 }
 0x84a   :  { %v2036_v59 = vpop.f32.mrf.mxu1 }
 0x84b   :  { %v1392_v60 = vadd.f32 %v1707_v4, %v1382_v63 }
 0x84d   :  { %1393 = vst [vmem:[%s2551_s4] sm:$0xff] %v1392_v60 }
 0x858   :  { %v1628_v2 = vpop.f32.mrf.mxu1 }
 0x859   :  { %v1629_v61 = vadd.f32 %v1628_v2, %v2464_v52 }
 0x85a   :  { %v2074_v62 = vpop.f32.mrf.mxu1 }
 0x85b   :  { %v1640_v0 = vadd.f32 %v1735_v1, %v1629_v61 }
 0x85d   :  { %1736 = vst [vmem:[%s2551_s4 + $0x8] sm:$0xff] %v1640_v0 }
 0x85e   :  { %1647 = vsyncpa [#allocation3], 1 }

</bundles_post_ra>
